<compile_context>
chip_gen: v6e
topology: v6e:2x2x1
jax: 0.10.0
libtpu: 0.0.40
codegen_flags: <defaults>
</compile_context>

<pallas_src>
import jax
import jax.numpy as jnp
from jax.experimental import pallas as pl
from jax.experimental.pallas import tpu as pltpu


def _append_ones_2d_kernel(x_ref, o_ref):
    # x_ref: (NB, C*H*W), o_ref: (NB, (C+1)*H*W)  -- fully lane-dense path
    k = x_ref.shape[1]
    o_ref[:, :k] = x_ref[...]
    o_ref[:, k:] = jnp.ones((o_ref.shape[0], o_ref.shape[1] - k), dtype=o_ref.dtype)


def _append_ones_3d_kernel(x_ref, o_ref):
    # x_ref: (NB, C, H*W), o_ref: (NB, C+1, H*W)  -- fallback when H*W % 128 != 0
    c = x_ref.shape[1]
    o_ref[:, :c, :] = x_ref[...]
    o_ref[:, c:, :] = jnp.ones(
        (o_ref.shape[0], 1, o_ref.shape[2]), dtype=o_ref.dtype
    )


def _batch_block(n, block_row_bytes, target_bytes=2 * 1024 * 1024):
    """Rows (batch elements) per grid step.

    ~`target_bytes` of in+out payload per block => ~4 MiB with 2-deep
    pipelining; safely under v5e's 16 MiB scoped VMEM default and well under
    v7x's 32 MiB scoped / 64 MiB physical VMEM.
    """
    nb = max(1, target_bytes // max(1, block_row_bytes))
    nb = min(nb, n)
    if nb < n:
        # Keep the sublane (second-to-last) block dim a multiple of 8.
        nb = min(n, max(8, (nb // 8) * 8))
    elif n >= 16:
        # Even when everything fits in one block, split into >=2 parallel grid
        # steps so v7x's second TensorCore gets work (no-op on v5e/v6e).
        nb = min(n, max(8, ((pl.cdiv(n, 2) + 7) // 8) * 8))
    return nb


def homogeneous_coord(x):
    """Append a ones channel along axis 1 (NCHW), like torch.cat((x, ones), 1)."""
    n, c, h, w = x.shape
    hw = h * w
    itemsize = jnp.dtype(x.dtype).itemsize
    # Pure-bandwidth op: read N*C*H*W, write N*(C+1)*H*W elements.
    cost = pl.CostEstimate(
        flops=0, transcendentals=0, bytes_accessed=itemsize * n * (2 * c + 1) * hw
    )
    compiler_params = pltpu.CompilerParams(dimension_semantics=("parallel",))

    if hw % 128 == 0:
        # Fully lane-dense path: flatten (C, H, W) -> C*H*W onto the lane axis.
        # The channel split at C*H*W lands on a lane-tile boundary, so both
        # stores in the kernel are unmasked.
        in_cols, out_cols = c * hw, (c + 1) * hw
        nb = _batch_block(n, (in_cols + out_cols) * itemsize)
        out2 = pl.pallas_call(
            _append_ones_2d_kernel,
            out_shape=jax.ShapeDtypeStruct((n, out_cols), x.dtype),
            grid=(pl.cdiv(n, nb),),
            in_specs=[pl.BlockSpec((nb, in_cols), lambda i: (i, 0))],
            out_specs=pl.BlockSpec((nb, out_cols), lambda i: (i, 0)),
            compiler_params=compiler_params,
            cost_estimate=cost,
        )(x.reshape(n, in_cols))
        return out2.reshape(n, c + 1, h, w)

    # Fallback: fold only H*W onto the lane axis (still far denser than W alone).
    nb = _batch_block(n, (2 * c + 1) * hw * itemsize)
    out3 = pl.pallas_call(
        _append_ones_3d_kernel,
        out_shape=jax.ShapeDtypeStruct((n, c + 1, hw), x.dtype),
        grid=(pl.cdiv(n, nb),),
        in_specs=[pl.BlockSpec((nb, c, hw), lambda i: (i, 0, 0))],
        out_specs=pl.BlockSpec((nb, c + 1, hw), lambda i: (i, 0, 0)),
        compiler_params=compiler_params,
        cost_estimate=cost,
    )(x.reshape(n, c, hw))
    return out3.reshape(n, c + 1, h, w)


if __name__ == "__main__":
    key = jax.random.PRNGKey(0)
    # Small NCHW input consistent with the module's forward pass.
    x = jax.random.normal(key, (2, 4, 16, 16), dtype=jnp.float32)

    z = jax.block_until_ready(homogeneous_coord(x))

    ref = jnp.concatenate(
        [x, jnp.ones((x.shape[0], 1, x.shape[2], x.shape[3]), x.dtype)], axis=1
    )
    assert z.shape == (2, 5, 16, 16), z.shape
    assert jnp.array_equal(z, ref), "mismatch vs reference concat (lane-dense path)"

    # Also exercise the H*W % 128 != 0 fallback path.
    x_odd = jax.random.normal(jax.random.PRNGKey(1), (2, 3, 5, 7), dtype=jnp.float32)
    z_odd = jax.block_until_ready(homogeneous_coord(x_odd))
    ref_odd = jnp.concatenate([x_odd, jnp.ones((2, 1, 5, 7), x_odd.dtype)], axis=1)
    assert z_odd.shape == (2, 4, 5, 7), z_odd.shape
    assert jnp.array_equal(z_odd, ref_odd), "mismatch vs reference concat (fallback path)"

    print("KERNEL_OK")
</pallas_src>

<mosaic_0001>
module attributes {stable_mosaic.version = 11 : i64} {
  func.func @_append_ones_2d_kernel(%arg0: i32, %arg1: memref<2x1024xf32, #tpu.memory_space<vmem>>, %arg2: memref<2x1280xf32, #tpu.memory_space<vmem>>) attributes {dimension_semantics = [#tpu.dimension_semantics<parallel>], iteration_bounds = array<i64: 1>, scalar_prefetch = 0 : i64, scratch_operands = 0 : i64, tpu.core_type = #tpu.core_type<tc>, window_params = [{transform_indices = @transform_0, window_bounds = array<i64: 2, 1024>}, {transform_indices = @transform_1, window_bounds = array<i64: 2, 1280>}]} {
    %c0 = arith.constant 0 : index
    %c0_0 = arith.constant 0 : index
    %0 = vector.load %arg1[%c0, %c0_0] : memref<2x1024xf32, #tpu.memory_space<vmem>>, vector<2x1024xf32>
    %c0_1 = arith.constant 0 : index
    %c0_2 = arith.constant 0 : index
    %1 = vector.load %arg2[%c0_1, %c0_2] : memref<2x1280xf32, #tpu.memory_space<vmem>>, vector<2x1024xf32>
    tpu.vector_store %arg2[%c0_1, %c0_2], %0 {strides = array<i32>} : memref<2x1280xf32, #tpu.memory_space<vmem>>, vector<2x1024xf32>,
    %cst = arith.constant 1.000000e+00 : f32
    %2 = vector.broadcast %cst : f32 to vector<2x256xf32>
    %c0_3 = arith.constant 0 : index
    %c1024 = arith.constant 1024 : index
    %3 = vector.load %arg2[%c0_3, %c1024] : memref<2x1280xf32, #tpu.memory_space<vmem>>, vector<2x256xf32>
    tpu.vector_store %arg2[%c0_3, %c1024], %2 {strides = array<i32>} : memref<2x1280xf32, #tpu.memory_space<vmem>>, vector<2x256xf32>,
    return
  }
  func.func @transform_0(%arg0: i32) -> (i32, i32) {
    %c0_i32 = arith.constant 0 : i32
    %c0_i32_0 = arith.constant 0 : i32
    return %arg0, %c0_i32 : i32, i32
  }
  func.func @transform_1(%arg0: i32) -> (i32, i32) {
    %c0_i32 = arith.constant 0 : i32
    %c0_i32_0 = arith.constant 0 : i32
    return %arg0, %c0_i32 : i32, i32
  }
}

</mosaic_0001>

<bundles_post_ra>
// kernel: tpu_custom_call.1
= control target key start
LH: loop header
LB: loop body
LE: loop exit
PB: predicated region body
PF: predicated region fallthrough
CT: control target
= control target key end

     0   :  { %6 = vsyncpa [#allocation3], 0  ;;  %s107_s0 = inlined_call_operand.hbm [shape: f32[2,1024], index: 0, kind: input, shape index: {}]   ;;  %s108_s1 = inlined_call_operand.hbm [shape: f32[2,1280], index: 1, kind: output, shape index: {}]  }
   0x1   :  { %7 = vsyncpa [#allocation4], 0  ;;  %s88_s6 = smov [#allocation2]  }
   0x2   :  { %s14_s7 = sshll.u32 %s88_s6, 4  ;;  %s15_s7 = int_to_ptr.vmem [resolvable:$true] %s14_s7 }
   0x3   :  { %s52_s8 = scalar_lea.vmem %s15_s7, 256  ;;  %p57_p1 = scmp.lt.s32.totalorder %s15_s7, %s15_s7 }
   0x4   :  { %p53_p0 = scmp.ne.s32.totalorder %s15_s7, %s52_s8  ;;  %p58_p2 = scmp.lt.s32.totalorder %s52_s8, %s52_s8 }
   0x6   :  { %p59_p3 = por %p58_p2, %p57_p1 }
   0x8   :  { %p60_p4 = pnand %p59_p3, %p53_p0 }
   0xa   :  { %63 = shalt.err (!%p60_p4)
}
   0xb   :  { %17 = dma.hbm_to_vmem [thread:$0]  %s107_s0, 256, %s15_s7, [#allocation3]  }
   0xc   :  { %84 = dma.done.wait [#allocation3], 256  }
   0xd   :  { %85 = vsyncadd [#allocation3], 4294967040  ;;  %v89_v0 = vmov 1.0   ;;  %s90_s11 = smov [#allocation5]   ;;  %v21_v1 = vld [vmem:[#allocation2] sm:$0xff]  ;;  %v22_v2 = vld [vmem:[#allocation2 + $0x8] sm:$0xff] }
   0xe   :  { %25 = vst [vmem:[#allocation5 + $0x10] sm:$0xf] %v89_v0  ;;  %s32_s12 = sshll.u32 %s90_s11, 4  ;;  %23 = vst [vmem:[#allocation5] sm:$0xff] %v21_v1  ;;  %s33_s12 = int_to_ptr.vmem [resolvable:$true] %s32_s12 }
   0xf   :  { %24 = vst [vmem:[#allocation5 + $0x8] sm:$0xff] %v22_v2  ;;  %s64_s13 = scalar_lea.vmem %s33_s12, 320  ;;  %p69_p6 = scmp.lt.s32.totalorder %s33_s12, %s33_s12 }
  0x10   :  { %p65_p5 = scmp.ne.s32.totalorder %s33_s12, %s64_s13  ;;  %p70_p7 = scmp.lt.s32.totalorder %s64_s13, %s64_s13 }
  0x12   :  { %p71_p8 = por %p70_p7, %p69_p6 }
  0x14   :  { %p72_p9 = pnand %p71_p8, %p65_p5 }
  0x16   :  { %75 = shalt.err (!%p72_p9)
}
  0x17   :  { %35 = dma.vmem_to_hbm [thread:$0]  %s33_s12, 320, %s108_s1, [#allocation4]  }
  0x18   :  { %86 = dma.done.wait [#allocation4], 320  }
  0x19   :  { %87 = vsyncadd [#allocation4], 4294966976 }
  0x1a   :  { %39 = vsyncpa [#allocation3], 1 }
  0x1b   :  { %40 = vsyncpa [#allocation4], 1 }

</bundles_post_ra>
